<compile_context>
chip_gen: v7x
topology: tpu7x:2x2x1
jax: 0.10.0
libtpu: 0.0.40
codegen_flags: <defaults>
</compile_context>

<pallas_src>
import numpy as np
import jax
import jax.numpy as jnp
from jax import lax
from jax.experimental import pallas as pl
from jax.experimental.pallas import tpu as pltpu

MODEL_LAYERS = (32,) * 6
D_IN = 2
D_OUT = 3
NUM_RELU = 5            # ReLU after the first 5 linears only (reference path)
NUM_STACKED = 4         # (32,32)+ReLU layers kept in the kernel's stacked loop
LANE_CHUNK = 512        # in-kernel lane window (keeps activations in vregs)
MIN_GRID_STEPS = 8      # >= 4 pipelined steps per TensorCore on v7x
MAX_TILE_N = 8192       # per-step lane width cap (amortizes ~600-cycle step cost)


# ---------------- deterministic parameter init (mirrors the torch module) -------------
def orthonormalize(x: np.ndarray) -> np.ndarray:
    x[0] /= np.linalg.norm(x[0])
    for i in range(1, x.shape[0]):
        x[i:] = (x[i:].T - np.dot(x[i:], x[i - 1]) * x[i - 1][:, None]).T
        x[i] /= np.linalg.norm(x[i])
    return x


def random_ball(rng, num_points, dimension, radius=1.0, inside=True, ortho=False):
    random_directions = rng.normal(size=(dimension, num_points))
    random_directions /= np.linalg.norm(random_directions, axis=0)
    if ortho:
        orthonormalize(random_directions[:, :dimension].T)
    if inside:
        random_radii = rng.random(num_points) ** (1.0 / dimension)
        return radius * (random_directions * random_radii).T
    return random_directions.T


def build_mlp_params(input_dim=D_IN, output_dim=D_OUT, layers=MODEL_LAYERS, seed=0):
    """Returns list of 7 (W, b) with W in torch (out, in) convention, float32."""
    rng = np.random.default_rng(seed)  # deterministic stand-in for the global np.random
    embedder_shape = layers[:-1]
    embedding_size = layers[-1]
    dims = (input_dim,) + embedder_shape            # (2, 32, 32, 32, 32, 32)
    params = []
    # embedder: 5x (Linear + ReLU) ...
    for in_size, out_size in zip(dims[:-1], dims[1:]):
        W = random_ball(rng, out_size, in_size, ortho=True).astype(np.float32)  # (out, in)
        b = np.linspace(-2, 2, out_size).astype(np.float32)
        params.append((W, b))
    # ... + final embedder Linear (no ReLU)
    W = random_ball(rng, embedding_size, dims[-1], ortho=True).astype(np.float32)
    b = np.linspace(-2, 2, embedding_size).astype(np.float32)
    params.append((W, b))
    # last_layer Linear(embedding_size, output_dim)
    W = random_ball(rng, output_dim, embedding_size, ortho=True)
    orthonormalize(W[: W.shape[1]])
    W = W.astype(np.float32)
    b = np.linspace(-0.2, 0.2, output_dim).astype(np.float32)
    params.append((W, b))
    return params


# ---------------- Pallas kernel ---------------------------------------------------------
def make_mlp_kernel(*, d_in, n_stacked, chunk, n_chunks):
    """Builds the kernel body. Batch-on-lanes layout:

    x_ref : (d_in, T)      w0_ref: (H, d_in)   b0_ref: (H, 1)
    wh_ref: (n_stacked, H, H)   bh_ref: (n_stacked, H, 1)
    wf_ref: (d_out, H)     bf_ref: (d_out, 1)     (pre-fused last two linears)
    o_ref : (d_out, T)

    INVARIANT: the math is purely lane-local (all contractions are over the
    sublane/feature axis).  The last grid block may be ragged; its padded lanes
    hold arbitrary data, which is safe ONLY while no cross-lane reduction is
    ever added to this kernel.
    """

    def mlp_kernel(x_ref, w0_ref, b0_ref, wh_ref, bh_ref, wf_ref, bf_ref, o_ref):
        w0 = w0_ref[...]                       # (H, d_in)
        b0 = b0_ref[...]                       # (H, 1)
        wf = wf_ref[...]                       # (d_out, H)
        bf = bf_ref[...]                       # (d_out, 1)

        def run_chunk(off):
            x = x_ref[:, pl.ds(off, chunk)]    # (d_in, chunk)
            # Layer 0 (K = d_in = 2): VPU broadcast FMAs — skip a near-empty MXU pass.
            h = b0                             # (H, 1) broadcasts along lanes
            for c in range(d_in):
                h = h + w0[:, c:c + 1] * x[c:c + 1, :]     # (H,1)*(1,chunk)
            h = jnp.maximum(h, 0.0)
            # 4 stacked (32,32) linears, each followed by ReLU.
            for li in range(n_stacked):
                h = jnp.dot(wh_ref[li], h, preferred_element_type=jnp.float32) + bh_ref[li]
                h = jnp.maximum(h, 0.0)
            # Fused (final embedder Linear ∘ last_layer): (d_out,H) @ (H,chunk) + (d_out,1)
            o_ref[:, pl.ds(off, chunk)] = (
                jnp.dot(wf, h, preferred_element_type=jnp.float32) + bf
            ).astype(o_ref.dtype)

        if n_chunks == 1:
            run_chunk(0)
        else:
            def body(c, carry):
                off = pl.multiple_of(c * chunk, chunk)
                run_chunk(off)
                return carry
            lax.fori_loop(0, n_chunks, body, 0, unroll=(n_chunks <= 4))

    return mlp_kernel


def _pick_tile_n(n):
    """Lane-tile width: >= MIN_GRID_STEPS grid steps (v7x megacore + pipelining),
    capped at MAX_TILE_N, 128-aligned, and a multiple of LANE_CHUNK when large."""
    t = -(-n // MIN_GRID_STEPS)                 # cdiv
    t = -(-t // 128) * 128                      # round up to a 128-lane multiple
    t = max(128, min(t, MAX_TILE_N))
    if t > LANE_CHUNK:
        t = -(-t // LANE_CHUNK) * LANE_CHUNK    # multiple of the in-kernel chunk
        t = min(t, MAX_TILE_N)
    return t


def _pack_params(params):
    """Torch (out,in) weights used directly; last two linears fused in float64."""
    assert len(params) == NUM_RELU + 2          # 5 (Linear+ReLU) + embedder-final + last
    H = params[1][0].shape[0]                   # 32
    d_in = params[0][0].shape[1]
    d_out = params[-1][0].shape[0]

    w0 = jnp.asarray(params[0][0], jnp.float32)                          # (H, d_in)
    b0 = jnp.asarray(params[0][1], jnp.float32).reshape(H, 1)            # (H, 1)
    wh = jnp.stack([jnp.asarray(params[i][0], jnp.float32)
                    for i in range(1, 1 + NUM_STACKED)])                 # (4, H, H)
    bh = jnp.stack([jnp.asarray(params[i][1], jnp.float32).reshape(H, 1)
                    for i in range(1, 1 + NUM_STACKED)])                 # (4, H, 1)

    # Fold:  last_layer(embedder_final(h)) = (Wl @ W5) h + (Wl @ b5 + bl)
    W5 = np.asarray(params[5][0], np.float64)   # (H, H)
    b5 = np.asarray(params[5][1], np.float64)   # (H,)
    Wl = np.asarray(params[6][0], np.float64)   # (d_out, H)
    bl = np.asarray(params[6][1], np.float64)   # (d_out,)
    wf = jnp.asarray((Wl @ W5).astype(np.float32))                       # (d_out, H)
    bf = jnp.asarray((Wl @ b5 + bl).astype(np.float32).reshape(d_out, 1))  # (d_out, 1)
    return d_in, H, d_out, (w0, b0, wh, bh, wf, bf)


def mlp_forward_fb(x_fb, params, *, tile_n=None):
    """Primary API — feature-major, lane-dense layout end to end.

    x_fb: (d_in, N) float32.  Returns (d_out, N) float32.
    No transposes, no padding: the ragged last batch block is masked by Pallas.
    """
    d_in_x, N = x_fb.shape
    d_in, H, d_out, (w0, b0, wh, bh, wf, bf) = _pack_params(params)
    assert d_in_x == d_in

    if tile_n is None:
        tile_n = _pick_tile_n(N)
    assert tile_n % 128 == 0
    chunk = LANE_CHUNK if (tile_n >= LANE_CHUNK and tile_n % LANE_CHUNK == 0) else tile_n
    n_chunks = tile_n // chunk
    grid = (pl.cdiv(N, tile_n),)

    x_spec = pl.BlockSpec((d_in, tile_n), lambda i: (0, i))
    w0_spec = pl.BlockSpec((H, d_in), lambda i: (0, 0))
    b0_spec = pl.BlockSpec((H, 1), lambda i: (0, 0))
    wh_spec = pl.BlockSpec((NUM_STACKED, H, H), lambda i: (0, 0, 0))
    bh_spec = pl.BlockSpec((NUM_STACKED, H, 1), lambda i: (0, 0, 0))
    wf_spec = pl.BlockSpec((d_out, H), lambda i: (0, 0))
    bf_spec = pl.BlockSpec((d_out, 1), lambda i: (0, 0))
    out_spec = pl.BlockSpec((d_out, tile_n), lambda i: (0, i))

    param_bytes = 4 * (w0.size + b0.size + wh.size + bh.size + wf.size + bf.size)
    cost = pl.CostEstimate(
        flops=2 * N * (d_in * H + NUM_STACKED * H * H + H * d_out),
        transcendentals=0,
        bytes_accessed=4 * N * (d_in + d_out) + param_bytes,
    )

    kernel = make_mlp_kernel(d_in=d_in, n_stacked=NUM_STACKED,
                             chunk=chunk, n_chunks=n_chunks)

    out_fb = pl.pallas_call(
        kernel,
        out_shape=jax.ShapeDtypeStruct((d_out, N), jnp.float32),
        grid_spec=pltpu.PrefetchScalarGridSpec(
            num_scalar_prefetch=0,
            grid=grid,
            in_specs=[x_spec, w0_spec, b0_spec, wh_spec, bh_spec, wf_spec, bf_spec],
            out_specs=out_spec,
        ),
        compiler_params=pltpu.CompilerParams(
            # "parallel" lets v7x shard the batch-tile axis across its 2 TensorCores;
            # near-neutral on v5e/v6e.  Dense layout keeps VMEM use tiny (a few
            # hundred KiB even at tile_n=8192), so the default scoped limit is ample.
            dimension_semantics=("parallel",),
        ),
        cost_estimate=cost,
    )(x_fb, w0, b0, wh, bh, wf, bf)
    return out_fb


def mlp_forward(x, params, *, tile_n=None):
    """Convenience wrapper for torch-style (N, d_in) inputs.  NOTE: the two
    transposes are extra XLA passes over the activations; prefer mlp_forward_fb
    when the caller can hold the (features, batch) layout."""
    return mlp_forward_fb(jnp.asarray(x, jnp.float32).T, params, tile_n=tile_n).T


# ---------------- reference (plain JAX, unfused 7-layer form) --------------------------
def mlp_reference(x, params):
    h = jnp.asarray(x, jnp.float32)
    for li, (W, b) in enumerate(params):
        h = h @ jnp.asarray(W.T) + jnp.asarray(b)
        if li < NUM_RELU:
            h = jnp.maximum(h, 0.0)
    return h


if __name__ == "__main__":
    # Small deterministic test.  N=1024 with the auto tile picker gives an 8-step
    # grid (>= 4 steps per v7x TensorCore) while staying tiny and fast.
    N = 1024
    key = jax.random.PRNGKey(0)
    # Feature-major input: (d_in, N) — the kernel's native lane-dense layout.
    x_fb = jax.random.normal(key, (D_IN, N), dtype=jnp.float32)

    params = build_mlp_params(D_IN, D_OUT, MODEL_LAYERS, seed=0)

    out_fb = mlp_forward_fb(x_fb, params)
    out_fb = jax.block_until_ready(out_fb)

    ref = mlp_reference(x_fb.T, params)          # (N, d_out), unfused reference
    np.testing.assert_allclose(np.asarray(out_fb), np.asarray(ref).T,
                               rtol=5e-5, atol=1e-4)

    # Also exercise the (N, d_in) convenience path once.
    out_rm = jax.block_until_ready(mlp_forward(x_fb.T, params))
    np.testing.assert_allclose(np.asarray(out_rm), np.asarray(ref),
                               rtol=5e-5, atol=1e-4)

    print("KERNEL_OK")
</pallas_src>

<mosaic_0001>
module attributes {stable_mosaic.version = 11 : i64} {
  func.func @mlp_kernel(%arg0: i32, %arg1: memref<2x128xf32, #tpu.memory_space<vmem>>, %arg2: memref<32x2xf32, #tpu.memory_space<vmem>>, %arg3: memref<32x1xf32, #tpu.memory_space<vmem>>, %arg4: memref<4x32x32xf32, #tpu.memory_space<vmem>>, %arg5: memref<4x32x1xf32, #tpu.memory_space<vmem>>, %arg6: memref<3x32xf32, #tpu.memory_space<vmem>>, %arg7: memref<3x1xf32, #tpu.memory_space<vmem>>, %arg8: memref<3x128xf32, #tpu.memory_space<vmem>>) attributes {dimension_semantics = [#tpu.dimension_semantics<parallel>], iteration_bounds = array<i64: 8>, scalar_prefetch = 0 : i64, scratch_operands = 0 : i64, tpu.core_type = #tpu.core_type<tc>, window_params = [{transform_indices = @transform_0, window_bounds = array<i64: 2, 128>}, {pipeline_mode = #tpu.pipeline_mode<synchronous>, transform_indices = @transform_1, window_bounds = array<i64: 32, 2>}, {pipeline_mode = #tpu.pipeline_mode<synchronous>, transform_indices = @transform_2, window_bounds = array<i64: 32, 1>}, {pipeline_mode = #tpu.pipeline_mode<synchronous>, transform_indices = @transform_3, window_bounds = array<i64: 4, 32, 32>}, {pipeline_mode = #tpu.pipeline_mode<synchronous>, transform_indices = @transform_4, window_bounds = array<i64: 4, 32, 1>}, {pipeline_mode = #tpu.pipeline_mode<synchronous>, transform_indices = @transform_5, window_bounds = array<i64: 3, 32>}, {pipeline_mode = #tpu.pipeline_mode<synchronous>, transform_indices = @transform_6, window_bounds = array<i64: 3, 1>}, {transform_indices = @transform_7, window_bounds = array<i64: 3, 128>}]} {
    %c0 = arith.constant 0 : index
    %c0_0 = arith.constant 0 : index
    %0 = vector.load %arg2[%c0, %c0_0] : memref<32x2xf32, #tpu.memory_space<vmem>>, vector<32x2xf32>
    %c0_1 = arith.constant 0 : index
    %c0_2 = arith.constant 0 : index
    %1 = vector.load %arg3[%c0_1, %c0_2] : memref<32x1xf32, #tpu.memory_space<vmem>>, vector<32x1xf32>
    %c0_3 = arith.constant 0 : index
    %c0_4 = arith.constant 0 : index
    %2 = vector.load %arg6[%c0_3, %c0_4] : memref<3x32xf32, #tpu.memory_space<vmem>>, vector<3x32xf32>
    %c0_5 = arith.constant 0 : index
    %c0_6 = arith.constant 0 : index
    %3 = vector.load %arg7[%c0_5, %c0_6] : memref<3x1xf32, #tpu.memory_space<vmem>>, vector<3x1xf32>
    %c0_7 = arith.constant 0 : index
    %c0_8 = arith.constant 0 : index
    %4 = vector.load %arg1[%c0_7, %c0_8] : memref<2x128xf32, #tpu.memory_space<vmem>>, vector<2x128xf32>
    %5 = vector.extract_strided_slice %0 {offsets = [0, 0], sizes = [32, 1], strides = [1, 1]} : vector<32x2xf32> to vector<32x1xf32>
    %6 = vector.extract_strided_slice %4 {offsets = [0, 0], sizes = [1, 128], strides = [1, 1]} : vector<2x128xf32> to vector<1x128xf32>
    %7 = vector.broadcast %5 : vector<32x1xf32> to vector<32x128xf32>
    %8 = vector.broadcast %6 : vector<1x128xf32> to vector<32x128xf32>
    %9 = arith.mulf %7, %8 : vector<32x128xf32>
    %10 = vector.broadcast %1 : vector<32x1xf32> to vector<32x128xf32>
    %11 = arith.addf %10, %9 : vector<32x128xf32>
    %12 = vector.extract_strided_slice %0 {offsets = [0, 1], sizes = [32, 1], strides = [1, 1]} : vector<32x2xf32> to vector<32x1xf32>
    %13 = vector.extract_strided_slice %4 {offsets = [1, 0], sizes = [1, 128], strides = [1, 1]} : vector<2x128xf32> to vector<1x128xf32>
    %14 = vector.broadcast %12 : vector<32x1xf32> to vector<32x128xf32>
    %15 = vector.broadcast %13 : vector<1x128xf32> to vector<32x128xf32>
    %16 = arith.mulf %14, %15 : vector<32x128xf32>
    %17 = arith.addf %11, %16 : vector<32x128xf32>
    %cst = arith.constant 0.000000e+00 : f32
    %18 = vector.broadcast %cst : f32 to vector<32x128xf32>
    %19 = arith.maximumf %17, %18 : vector<32x128xf32>
    %c0_9 = arith.constant 0 : index
    %c0_10 = arith.constant 0 : index
    %c0_11 = arith.constant 0 : index
    %20 = vector.load %arg4[%c0_9, %c0_10, %c0_11] : memref<4x32x32xf32, #tpu.memory_space<vmem>>, vector<1x32x32xf32>
    %21 = vector.shape_cast %20 : vector<1x32x32xf32> to vector<32x32xf32>
    %cst_12 = arith.constant dense<0.000000e+00> : vector<32x128xf32>
    %22 = tpu.matmul %21, %19, %cst_12 {dimension_numbers = #tpu.dot_dimension_numbers<[1], [0], [0], [1], [0, 0, 1, 1], [], []>} : vector<32x32xf32>, vector<32x128xf32>, vector<32x128xf32> -> vector<32x128xf32>
    %c0_13 = arith.constant 0 : index
    %c0_14 = arith.constant 0 : index
    %c0_15 = arith.constant 0 : index
    %23 = vector.load %arg5[%c0_13, %c0_14, %c0_15] : memref<4x32x1xf32, #tpu.memory_space<vmem>>, vector<1x32x1xf32>
    %24 = vector.shape_cast %23 : vector<1x32x1xf32> to vector<32x1xf32>
    %25 = vector.broadcast %24 : vector<32x1xf32> to vector<32x128xf32>
    %26 = arith.addf %22, %25 : vector<32x128xf32>
    %cst_16 = arith.constant 0.000000e+00 : f32
    %27 = vector.broadcast %cst_16 : f32 to vector<32x128xf32>
    %28 = arith.maximumf %26, %27 : vector<32x128xf32>
    %c1 = arith.constant 1 : index
    %c0_17 = arith.constant 0 : index
    %c0_18 = arith.constant 0 : index
    %29 = vector.load %arg4[%c1, %c0_17, %c0_18] : memref<4x32x32xf32, #tpu.memory_space<vmem>>, vector<1x32x32xf32>
    %30 = vector.shape_cast %29 : vector<1x32x32xf32> to vector<32x32xf32>
    %cst_19 = arith.constant dense<0.000000e+00> : vector<32x128xf32>
    %31 = tpu.matmul %30, %28, %cst_19 {dimension_numbers = #tpu.dot_dimension_numbers<[1], [0], [0], [1], [0, 0, 1, 1], [], []>} : vector<32x32xf32>, vector<32x128xf32>, vector<32x128xf32> -> vector<32x128xf32>
    %c1_20 = arith.constant 1 : index
    %c0_21 = arith.constant 0 : index
    %c0_22 = arith.constant 0 : index
    %32 = vector.load %arg5[%c1_20, %c0_21, %c0_22] : memref<4x32x1xf32, #tpu.memory_space<vmem>>, vector<1x32x1xf32>
    %33 = vector.shape_cast %32 : vector<1x32x1xf32> to vector<32x1xf32>
    %34 = vector.broadcast %33 : vector<32x1xf32> to vector<32x128xf32>
    %35 = arith.addf %31, %34 : vector<32x128xf32>
    %cst_23 = arith.constant 0.000000e+00 : f32
    %36 = vector.broadcast %cst_23 : f32 to vector<32x128xf32>
    %37 = arith.maximumf %35, %36 : vector<32x128xf32>
    %c2 = arith.constant 2 : index
    %c0_24 = arith.constant 0 : index
    %c0_25 = arith.constant 0 : index
    %38 = vector.load %arg4[%c2, %c0_24, %c0_25] : memref<4x32x32xf32, #tpu.memory_space<vmem>>, vector<1x32x32xf32>
    %39 = vector.shape_cast %38 : vector<1x32x32xf32> to vector<32x32xf32>
    %cst_26 = arith.constant dense<0.000000e+00> : vector<32x128xf32>
    %40 = tpu.matmul %39, %37, %cst_26 {dimension_numbers = #tpu.dot_dimension_numbers<[1], [0], [0], [1], [0, 0, 1, 1], [], []>} : vector<32x32xf32>, vector<32x128xf32>, vector<32x128xf32> -> vector<32x128xf32>
    %c2_27 = arith.constant 2 : index
    %c0_28 = arith.constant 0 : index
    %c0_29 = arith.constant 0 : index
    %41 = vector.load %arg5[%c2_27, %c0_28, %c0_29] : memref<4x32x1xf32, #tpu.memory_space<vmem>>, vector<1x32x1xf32>
    %42 = vector.shape_cast %41 : vector<1x32x1xf32> to vector<32x1xf32>
    %43 = vector.broadcast %42 : vector<32x1xf32> to vector<32x128xf32>
    %44 = arith.addf %40, %43 : vector<32x128xf32>
    %cst_30 = arith.constant 0.000000e+00 : f32
    %45 = vector.broadcast %cst_30 : f32 to vector<32x128xf32>
    %46 = arith.maximumf %44, %45 : vector<32x128xf32>
    %c3 = arith.constant 3 : index
    %c0_31 = arith.constant 0 : index
    %c0_32 = arith.constant 0 : index
    %47 = vector.load %arg4[%c3, %c0_31, %c0_32] : memref<4x32x32xf32, #tpu.memory_space<vmem>>, vector<1x32x32xf32>
    %48 = vector.shape_cast %47 : vector<1x32x32xf32> to vector<32x32xf32>
    %cst_33 = arith.constant dense<0.000000e+00> : vector<32x128xf32>
    %49 = tpu.matmul %48, %46, %cst_33 {dimension_numbers = #tpu.dot_dimension_numbers<[1], [0], [0], [1], [0, 0, 1, 1], [], []>} : vector<32x32xf32>, vector<32x128xf32>, vector<32x128xf32> -> vector<32x128xf32>
    %c3_34 = arith.constant 3 : index
    %c0_35 = arith.constant 0 : index
    %c0_36 = arith.constant 0 : index
    %50 = vector.load %arg5[%c3_34, %c0_35, %c0_36] : memref<4x32x1xf32, #tpu.memory_space<vmem>>, vector<1x32x1xf32>
    %51 = vector.shape_cast %50 : vector<1x32x1xf32> to vector<32x1xf32>
    %52 = vector.broadcast %51 : vector<32x1xf32> to vector<32x128xf32>
    %53 = arith.addf %49, %52 : vector<32x128xf32>
    %cst_37 = arith.constant 0.000000e+00 : f32
    %54 = vector.broadcast %cst_37 : f32 to vector<32x128xf32>
    %55 = arith.maximumf %53, %54 : vector<32x128xf32>
    %cst_38 = arith.constant dense<0.000000e+00> : vector<3x128xf32>
    %56 = tpu.matmul %2, %55, %cst_38 {dimension_numbers = #tpu.dot_dimension_numbers<[1], [0], [0], [1], [0, 0, 1, 1], [], []>} : vector<3x32xf32>, vector<32x128xf32>, vector<3x128xf32> -> vector<3x128xf32>
    %57 = vector.broadcast %3 : vector<3x1xf32> to vector<3x128xf32>
    %58 = arith.addf %56, %57 : vector<3x128xf32>
    %c0_39 = arith.constant 0 : index
    %c0_40 = arith.constant 0 : index
    %59 = vector.load %arg8[%c0_39, %c0_40] : memref<3x128xf32, #tpu.memory_space<vmem>>, vector<3x128xf32>
    tpu.vector_store %arg8[%c0_39, %c0_40], %58 {strides = array<i32>} : memref<3x128xf32, #tpu.memory_space<vmem>>, vector<3x128xf32>,
    return
  }
  func.func @transform_0(%arg0: i32) -> (i32, i32) {
    %c0_i32 = arith.constant 0 : i32
    %c0_i32_0 = arith.constant 0 : i32
    return %c0_i32, %arg0 : i32, i32
  }
  func.func @transform_1(%arg0: i32) -> (i32, i32) {
    %c0_i32 = arith.constant 0 : i32
    %c0_i32_0 = arith.constant 0 : i32
    %c0_i32_1 = arith.constant 0 : i32
    return %c0_i32, %c0_i32_0 : i32, i32
  }
  func.func @transform_2(%arg0: i32) -> (i32, i32) {
    %c0_i32 = arith.constant 0 : i32
    %c0_i32_0 = arith.constant 0 : i32
    %c0_i32_1 = arith.constant 0 : i32
    return %c0_i32, %c0_i32_0 : i32, i32
  }
  func.func @transform_3(%arg0: i32) -> (i32, i32, i32) {
    %c0_i32 = arith.constant 0 : i32
    %c0_i32_0 = arith.constant 0 : i32
    %c0_i32_1 = arith.constant 0 : i32
    %c0_i32_2 = arith.constant 0 : i32
    return %c0_i32, %c0_i32_0, %c0_i32_1 : i32, i32, i32
  }
  func.func @transform_4(%arg0: i32) -> (i32, i32, i32) {
    %c0_i32 = arith.constant 0 : i32
    %c0_i32_0 = arith.constant 0 : i32
    %c0_i32_1 = arith.constant 0 : i32
    %c0_i32_2 = arith.constant 0 : i32
    return %c0_i32, %c0_i32_0, %c0_i32_1 : i32, i32, i32
  }
  func.func @transform_5(%arg0: i32) -> (i32, i32) {
    %c0_i32 = arith.constant 0 : i32
    %c0_i32_0 = arith.constant 0 : i32
    %c0_i32_1 = arith.constant 0 : i32
    return %c0_i32, %c0_i32_0 : i32, i32
  }
  func.func @transform_6(%arg0: i32) -> (i32, i32) {
    %c0_i32 = arith.constant 0 : i32
    %c0_i32_0 = arith.constant 0 : i32
    %c0_i32_1 = arith.constant 0 : i32
    return %c0_i32, %c0_i32_0 : i32, i32
  }
  func.func @transform_7(%arg0: i32) -> (i32, i32) {
    %c0_i32 = arith.constant 0 : i32
    %c0_i32_0 = arith.constant 0 : i32
    return %c0_i32, %arg0 : i32, i32
  }
}

</mosaic_0001>

<bundles_post_ra>
// kernel: tpu_custom_call.1
= control target key start
LH: loop header
LB: loop body
LE: loop exit
PB: predicated region body
PF: predicated region fallthrough
CT: control target
= control target key end

     0   :  { %12 = vsyncpa [#allocation3], 0  ;;  %s1642_s0 = inlined_call_operand.vmem [shape: f32[2,1024], index: 0, kind: input, shape index: {}]   ;;  %s1643_s1 = inlined_call_operand.vmem [shape: f32[32,2], index: 1, kind: input, shape index: {}]   ;;  %s1644_s2 = inlined_call_operand.vmem [shape: f32[32,1], index: 2, kind: input, shape index: {}]   ;;  %s1645_s3 = inlined_call_operand.vmem [shape: f32[4,32,32], index: 3, kind: input, shape index: {}]   ;;  %s1646_s4 = inlined_call_operand.vmem [shape: f32[4,32,1], index: 4, kind: input, shape index: {}]   ;;  %s1647_s5 = inlined_call_operand.vmem [shape: f32[3,32], index: 5, kind: input, shape index: {}]   ;;  %s1648_s6 = inlined_call_operand.vmem [shape: f32[3,1], index: 6, kind: input, shape index: {}]   ;;  %s1649_s7 = inlined_call_operand.hbm [shape: f32[3,1024], index: 7, kind: output, shape index: {}]  }
   0x1   :  { %14 = vsyncpa [#allocation3 + $0x1], 0  ;;  %s1399_s24 = smov 0   ;;  %s1401_s25 = smov 0  }
   0x2   :  { %s1403_s26 = smov 0   ;;  %s1405_s27 = smov 0  }
   0x3 LB: > { %s1420_s28 = sadd.s32 4294967295, %s1351_s27   ;;  %s1044_s29 = sadd.s32 4294967294, %s1351_s27   ;;  %s1351_s27 = sphi %s1405_s27, %s1655_s27   ;;  %s1347_s26 = sphi %s1403_s26, %s1654_s26   ;;  %s1343_s25 = sphi %s1401_s25, %s1653_s25   ;;  %s1339_s24 = sphi %s1399_s24, %s1652_s24  }
   0x4   : > { %s1424_s30 = sadd.s32 1, %s1351_s27   ;;  %s179_s8 = sadd.s32 1, %s1347_s26 }
   0x5   : > { %s176_s9 = ssub.s32 %s1351_s27, %s1424_s30  ;;  %p189_p0 = scmp.ne.s32.totalorder %s1347_s26, %s1343_s25 }
   0x6   : > { %p177_p1 = scmp.eq.s32.totalorder %s176_s9, 0  ;;  %p190_p2 = scmp.eq.s32.totalorder %s1420_s28, 7 }
   0x7   : > { %p195_p3 = scmp.ne.s32.totalorder %s1343_s25, %s1339_s24  ;;  %p196_p4 = scmp.eq.s32.totalorder %s1044_s29, 7 }
   0x8   : > { %s1435_s10 = scalar_select %p177_p1, %s1347_s26, %s179_s8  }
   0x9   : > { %p1437_p5 = por %p190_p2, %p189_p0  ;;  %p1441_p6 = por %p196_p4, %p195_p3 }
   0xa   : > { %p1047_p7 = scmp.ge.s32.totalorder %s1351_s27, 1  ;;  %p239_p8 = scmp.lt.s32.totalorder %s1351_s27, 9 }
   0xc   : > { %p240_p9 = pnand %p1047_p7, %p239_p8 }
   0xd   : > { %v278_v0 = vld [vmem:[%s1644_s2] sm:$0xff] (!%p240_p9)  ;;  %v1353_v2 = vmov (!%p240_p9), 0   ;;  %v279_v3 = vld [vmem:[%s1644_s2 + $0x8] sm:$0xff] (!%p240_p9)  ;;  %v277_v5 = vld [vmem:[%s1643_s1 + $0x18] sm:$0xff] (!%p240_p9)  ;;  %v1354_v6 = vmov (!%p240_p9), 1   ;;  %vm397_vm0 = vcmask (!%p240_p9), 261120   ;;  %v305_v28 = vlaneseq (!%p240_p9) }
   0xe   : > { %243 = sbr.rel (%p240_p9) target bundleno = 1317 (0x525), region = 48  ;;  %v274_v1 = vld [vmem:[%s1643_s1] sm:$0xff] (!%p240_p9)  ;;  %1282 = vset.pattern.permute.xlu1 (!%p240_p9), %v1353_v2  ;;  %1281 = vset.pattern.permute.xlu0 (!%p240_p9), %v1353_v2  ;;  %v275_v4 = vld [vmem:[%s1643_s1 + $0x8] sm:$0xff] (!%p240_p9)  ;;  %v276_v7 = vld [vmem:[%s1643_s1 + $0x10] sm:$0xff] (!%p240_p9)  ;;  %p270_p10 = scmp.lt.s32.totalorder (!%p240_p9), %s1420_s28, 7  ;;  %vm1356_vm1 = vmmov (!%p240_p9), 0  }
   0xf   : > { %315 = vperm.xlu1 (!%p240_p9), %1282, %v278_v0   ;;  %287 = vperm.xlu0 (!%p240_p9), %1281, %v274_v1   ;;  %v280_v8 = vld [vmem:[%s1644_s2 + $0x10] sm:$0xff] (!%p240_p9)  ;;  %v281_v9 = vld [vmem:[%s1644_s2 + $0x18] sm:$0xff] (!%p240_p9)  ;;  %v369_v10 = vld [vmem:[%s1645_s3] sm:$0xff] (!%p240_p9)  ;;  %v306_v29 = vshrl.u32 (!%p240_p9), %v305_v28, 7  ;;  %s267_s18 = sand.u32 (!%p240_p9), 1, %s1343_s25   ;;  %s1092_s20 = sshll.u32 (!%p240_p9), %s1420_s28, 6 }
  0x10   : > { %1140 = vmatprep.mubr.msk.f32.mxu0 (!%p240_p9), %vm397_vm0, %v369_v10  ;;  %v373_v11 = vld [vmem:[%s1646_s4] sm:$0xff] (!%p240_p9)  ;;  %v374_v12 = vld [vmem:[%s1646_s4 + $0x8] sm:$0xff] (!%p240_p9)  ;;  %v375_v13 = vld [vmem:[%s1646_s4 + $0x10] sm:$0xff] (!%p240_p9)  ;;  %s1048_s19 = sshll.u32 (!%p240_p9), %s267_s18, 2  ;;  %s1600_s8 = scalar_lea.hbm (!%p240_p9), %s1649_s7, %s1092_s20 }
  0x11   : > { %v1058_v14 = vld [vmem:[%s1646_s4 + $0x20] sm:$0xff] (!%p240_p9)  ;;  %v376_v15 = vld [vmem:[%s1646_s4 + $0x18] sm:$0xff] (!%p240_p9)  ;;  %v1060_v16 = vld [vmem:[%s1646_s4 + $0x30] sm:$0xff] (!%p240_p9)  ;;  %v307_v32 = vsub.s32 (!%p240_p9), 0, %v306_v29  ;;  %v355_v33 = vsub.s32 (!%p240_p9), 1, %v306_v29  ;;  %s269_s21 = scalar_lea.vmem (!%p240_p9), [#allocation2], %s1048_s19 }
  0x12   : > { %v1059_v17 = vld [vmem:[%s1646_s4 + $0x28] sm:$0xff] (!%p240_p9)  ;;  %v1070_v18 = vld [vmem:[%s1646_s4 + $0x40] sm:$0xff] (!%p240_p9)  ;;  %v1061_v19 = vld [vmem:[%s1646_s4 + $0x38] sm:$0xff] (!%p240_p9)  ;;  %s985_s22 = sshll.u32 (!%p240_p9), %s269_s21, 4  ;;  %s972_s9 = scalar_lea.sflag (!%p240_p9), [#allocation3], %s267_s18  ;;  %s1602_s22 = int_to_ptr.vmem [resolvable:$true] %s985_s22 }
  0x13   : > { %320 = vperm.xlu1 (!%p240_p9), %1282, %v279_v3   ;;  %292 = vperm.xlu0 (!%p240_p9), %1281, %v275_v4   ;;  %v1072_v20 = vld [vmem:[%s1646_s4 + $0x50] sm:$0xff] (!%p240_p9)  ;;  %v1071_v21 = vld [vmem:[%s1646_s4 + $0x48] sm:$0xff] (!%p240_p9)  ;;  %v1082_v22 = vld [vmem:[%s1646_s4 + $0x60] sm:$0xff] (!%p240_p9) }
  0x14   : > { %v1073_v23 = vld [vmem:[%s1646_s4 + $0x58] sm:$0xff] (!%p240_p9)  ;;  %v1084_v24 = vld [vmem:[%s1646_s4 + $0x70] sm:$0xff] (!%p240_p9)  ;;  %v1083_v25 = vld [vmem:[%s1646_s4 + $0x68] sm:$0xff] (!%p240_p9) }
  0x15   : > { %v283_v26 = vld [vmem:[%s1648_s6] sm:$0x7]  ;;  %v1085_v27 = vld [vmem:[%s1646_s4 + $0x78] sm:$0xff]  ;;  %s271_s23 = scalar_select %p270_p10, %s1420_s28, 7  ;;  %v1056_v28 = vld [vmem:[%s1645_s3 + $0x30] sm:$0xff] }
  0x16   : > { %v1057_v29 = vld [vmem:[%s1645_s3 + $0x38] sm:$0xff]  ;;  %s1358_s28 = smov [#allocation2]  }
  0x17   : > { %1283 = vset.pattern.permute.xlu1 %v1354_v6  ;;  %302 = vperm.xlu0 %1281, %v277_v5   ;;  %s1049_s29 = sshll.u32 %s271_s23, 1  ;;  %s1293_s14 = sshll.u32 %s1358_s28, 4  ;;  %s1294_s14 = int_to_ptr.vmem [resolvable:$false] %s1293_s14 }
  0x18   : > { %342 = vperm.xlu1 %1283, %v275_v4   ;;  %s273_s13 = scalar_lea.vmem %s1642_s0, %s1049_s29  ;;  %s1295_s15 = scalar_lea.vmem %s1294_s14, 128 }
  0x19   : > { %v284_v34 = vld [vmem:[%s273_s13] sm:$0x3]  ;;  %s1289_s13 = scalar_lea.vmem %s1602_s22, 64  ;;  %p1296_p0 = scmp.lt.s32.totalorder %s1602_s22, %s1294_s14 }
  0x1a   : > { %v308_v37 = vrot.slane %v284_v34, %v307_v32  ;;  %v356_v38 = vrot.slane %v284_v34, %v355_v33  ;;  %p1290_p11 = scmp.ne.s32.totalorder %s1602_s22, %s1289_s13  ;;  %p1297_p1 = scmp.lt.s32.totalorder %s1295_s15, %s1289_s13 }
  0x1b   : > { %1285 = vset.pattern.permute.xlu0 %v1354_v6 }
  0x1c   : > { %1284 = vset.pattern.permute.xlu1 %v1353_v2  ;;  %338 = vperm.xlu0 %1285, %v274_v1   ;;  %p1291_p12 = pnand %p1290_p11, %p1437_p5  ;;  %p1298_p2 = por %p1297_p1, %p1296_p0 }
  0x1d   : > { %297 = vperm.xlu1 %1284, %v276_v7  }
  0x1e   : > { %p1292_p13 = pneg %p1291_p12 }
  0x20   : > { %346 = vperm.xlu0 %1285, %v276_v7   ;;  %v372_v7 = vld [vmem:[%s1645_s3 + $0x18] sm:$0xff]  ;;  %p1299_p3 = pnand %p1298_p2, %p1292_p13 }
  0x21   : > { %325 = vperm.xlu1 %1284, %v280_v8   ;;  %v1054_v8 = vld [vmem:[%s1645_s3 + $0x20] sm:$0xff] }
  0x22   : > { %1154 = vmatprep.mubr.msk.f32.mxu1 %vm397_vm0, %v1054_v8  ;;  %v1080_v8 = vld [vmem:[%s1645_s3 + $0x70] sm:$0xff] }
  0x24   : > { %1288 = vset.pattern.permute.xlu0 %v1353_v2 }
  0x25   : > { %330 = vperm.xlu1 %1284, %v281_v9   ;;  %384 = vperm.xlu0 %1288, %v374_v12  }
  0x29   : > { %1286 = vset.pattern.permute.xlu1 %v1354_v6  ;;  %511 = vperm.xlu0 %1288, %v1058_v14   ;;  %v371_v6 = vld [vmem:[%s1645_s3 + $0x10] sm:$0xff] }
  0x2a   : > { %350 = vperm.xlu1 %1286, %v277_v5   ;;  %v370_v5 = vld [vmem:[%s1645_s3 + $0x8] sm:$0xff] }
  0x2d   : > { %521 = vperm.xlu0 %1288, %v1060_v16  }
  0x2e   : > { %1287 = vset.pattern.permute.xlu1 %v1353_v2 }
  0x2f   : > { %379 = vperm.xlu1 %1287, %v373_v11  }
  0x31   : > { %642 = vperm.xlu0 %1288, %v1070_v18  }
  0x33   : > { %389 = vperm.xlu1 %1287, %v375_v13  }
  0x35   : > { %652 = vperm.xlu0 %1288, %v1072_v20  }
  0x37   : > { %394 = vperm.xlu1 %1287, %v376_v15  }
  0x39   : > { %773 = vperm.xlu0 %1288, %v1082_v22  }
  0x3b   : > { %516 = vperm.xlu1 %1287, %v1059_v17  }
  0x3d   : > { %783 = vperm.xlu0 %1288, %v1084_v24  }
  0x3f   : > { %526 = vperm.xlu1 %1287, %v1061_v19  }
  0x41   : > { %894 = vperm.xlu0 %1288, %v283_v26  }
  0x43   : > { %647 = vperm.xlu1 %1287, %v1071_v21  }
  0x47   : > { %657 = vperm.xlu1 %1287, %v1073_v23  }
  0x4b   : > { %778 = vperm.xlu1 %1287, %v1083_v25  }
  0x4f   : > { %788 = vperm.xlu1 %1287, %v1085_v27   ;;  %v1055_v27 = vld [vmem:[%s1645_s3 + $0x28] sm:$0xff] }
  0x8e   : > { %v316_v30 = vpop.permute.xlu1 %315  ;;  %v288_v31 = vpop.permute.xlu0 %287 }
  0x8f   : > { %v309_v42 = vmul.f32 %v308_v37, %v288_v31 }
  0x91   : > { %v333_v46 = vadd.f32 %v316_v30, %v309_v42  ;;  %v1066_v30 = vld [vmem:[%s1645_s3 + $0x40] sm:$0xff] }
  0x92   : > { %v321_v35 = vpop.permute.xlu1 %320  ;;  %v293_v36 = vpop.permute.xlu0 %292 }
  0x93   : > { %v310_v39 = vmul.f32 %v308_v37, %v293_v36 }
  0x95   : > { %v334_v44 = vadd.f32 %v321_v35, %v310_v39 }
  0x96   : > { %v303_v40 = vpop.permute.xlu0 %302 }
  0x97   : > { %v343_v41 = vpop.permute.xlu1 %342  ;;  %v312_v60 = vmul.f32 %v308_v37, %v303_v40 }
  0x98   : > { %v358_v43 = vmul.f32 %v356_v38, %v343_v41 }
  0x9a   : > { %v362_v47 = vadd.f32 %v358_v43, %v334_v44 }
  0x9b   : > { %v339_v45 = vpop.permute.xlu0 %338 }
  0x9c   : > { %v357_v48 = vmul.f32 %v356_v38, %v339_v45  ;;  %v298_v49 = vpop.permute.xlu1 %297  ;;  %v366_v51 = vmax.f32 %v362_v47, 0.0 }
  0x9d   : > { %v311_v56 = vmul.f32 %v308_v37, %v298_v49  ;;  %v1067_v49 = vld [vmem:[%s1645_s3 + $0x48] sm:$0xff] }
  0x9e   : > { %v361_v50 = vadd.f32 %v357_v48, %v333_v46 }
  0x9f   : > { %v347_v55 = vpop.permute.xlu0 %346 }
  0xa0   : > { %v365_v52 = vmax.f32 %v361_v50, 0.0  ;;  %v326_v53 = vpop.permute.xlu1 %325  ;;  %v359_v59 = vmul.f32 %v356_v38, %v347_v55  ;;  %v1068_v50 = vld [vmem:[%s1645_s3 + $0x50] sm:$0xff] }
  0xa1   : > { %v335_v58 = vadd.f32 %v326_v53, %v311_v56 }
  0xa2   : > { %v1199_v54 = vpack.c.bf16 %v366_v51, %v365_v52  ;;  %v1069_v51 = vld [vmem:[%s1645_s3 + $0x58] sm:$0xff]  ;;  %v1078_v52 = vld [vmem:[%s1645_s3 + $0x60] sm:$0xff] }
  0xa3   : > { %v363_v62 = vadd.f32 %v359_v59, %v335_v58 }
  0xa4   : > { %v331_v57 = vpop.permute.xlu1 %330  ;;  %1200 = vmatprep.subr.bf16.mxu0 %v1199_v54  ;;  %v385_v11 = vpop.permute.xlu0 %384 }
  0xa5   : > { %1202 = vmatpush3.bf16.msra.mxu0 %v1199_v54  ;;  %v336_v63 = vadd.f32 %v331_v57, %v312_v60  ;;  %v367_v2 = vmax.f32 %v363_v62, 0.0 }
  0xa8   : > { %v512_v32 = vpop.permute.xlu0 %511 }
  0xa9   : > { %v351_v61 = vpop.permute.xlu1 %350 }
  0xaa   : > { %v360_v0 = vmul.f32 %v356_v38, %v351_v61 }
  0xac   : > { %v364_v1 = vadd.f32 %v360_v0, %v336_v63  ;;  %v522_v41 = vpop.permute.xlu0 %521 }
  0xae   : > { %v368_v3 = vmax.f32 %v364_v1, 0.0  ;;  %v380_v9 = vpop.permute.xlu1 %379 }
  0xb0   : > { %v1203_v4 = vpack.c.bf16 %v368_v3, %v367_v2  ;;  %v643_v54 = vpop.permute.xlu0 %642 }
  0xb2   : > { %1204 = vmatprep.subr.bf16.mxu0 %v1203_v4  ;;  %v390_v10 = vpop.permute.xlu1 %389 }
  0xb3   : > { %1206 = vmatpush3.bf16.msra.mxu0 %v1203_v4 }
  0xb4   : > { %v653_v63 = vpop.permute.xlu0 %652 }
  0xb6   : > { %1141 = vmatmul.mubr.msk.f32.vlgmr.msra.gmra.mrb[0].mxu0 %vm397_vm0, %v370_v5  ;;  %v395_v17 = vpop.permute.xlu1 %394 }
  0xb7   : > { %1143 = vmatprep.mubr.msk.f32.mxu0 %vm397_vm0, %v371_v6 }
  0xba   : > { %1144 = vmatmul.mubr.msk.f32.gmra.mrb[2].mxu0 %vm397_vm0, %v372_v7  ;;  %v517_v31 = vpop.permute.xlu1 %516  ;;  %v1079_v7 = vld [vmem:[%s1645_s3 + $0x68] sm:$0xff] }
  0xbb   : > { %1168 = vmatprep.mubr.msk.f32.mxu0 %vm397_vm0, %v1066_v30  ;;  %v282_v30 = vld [vmem:[%s1647_s5] sm:$0x7] }
  0xbe   : > { %v527_v38 = vpop.permute.xlu1 %526 }
  0xc2   : > { %v648_v53 = vpop.permute.xlu1 %647 }
  0xc6   : > { %v658_v60 = vpop.permute.xlu1 %657 }
 0x189   : > { %v1142_v12 = vpop.f32.mrb[0].mxu0 }
 0x18a   : > { %v482_v13 = vadd.f32 %v1142_v12, %v385_v11  ;;  %v476_v14 = vpop.f32.mrb[1].mxu0  ;;  %v1357_v11 = vmov 0.0   ;;  %v779_v12 = vpop.permute.xlu1 %778 }
 0x18b   : > { %v477_v15 = vadd.f32 %v476_v14, %v380_v9  ;;  %v1081_v9 = vld [vmem:[%s1645_s3 + $0x78] sm:$0xff] }
 0x18c   : > { %v496_v16 = vmax.f32 %v482_v13, 0.0  ;;  %v774_v13 = vpop.permute.xlu0 %773 }
 0x18d   : > { %v495_v18 = vmax.f32 %v477_v15, 0.0  ;;  %v1145_v19 = vpop.f32.mrb[2].mxu0 }
 0x18e   : > { %v492_v20 = vadd.f32 %v1145_v19, %v395_v17  ;;  %v486_v21 = vpop.f32.mrb[3].mxu0  ;;  %v789_v19 = vpop.permute.xlu1 %788 }
 0x18f   : > { %v487_v22 = vadd.f32 %v486_v21, %v390_v10  ;;  %v1207_v23 = vpack.c.bf16 %v496_v16, %v495_v18  ;;  %v1355_v10 = vmov 0.0|0.0  }
 0x190   : > { %v498_v24 = vmax.f32 %v492_v20, 0.0 }
 0x191   : > { %v497_v25 = vmax.f32 %v487_v22, 0.0  ;;  %1208 = vmatprep.subr.bf16.mxu1 %v1207_v23  ;;  %v784_v22 = vpop.permute.xlu0 %783 }
 0x192   : > { %1210 = vmatpush3.bf16.msra.mxu1 %v1207_v23 }
 0x193   : > { %v1211_v26 = vpack.c.bf16 %v498_v24, %v497_v25 }
 0x195   : > { %1212 = vmatprep.subr.bf16.mxu1 %v1211_v26 }
 0x196   : > { %1214 = vmatpush3.bf16.msra.mxu1 %v1211_v26 }
 0x199   : > { %1155 = vmatmul.mubr.msk.f32.vlgmr.msra.gmra.mrb[0].mxu1 %vm397_vm0, %v1055_v27 }
 0x19a   : > { %1157 = vmatprep.mubr.msk.f32.mxu1 %vm397_vm0, %v1056_v28 }
 0x19d   : > { %1158 = vmatmul.mubr.msk.f32.gmra.mrb[2].mxu1 %vm397_vm0, %v1057_v29 }
 0x19e   : > { %1182 = vmatprep.mubr.msk.f32.mxu1 %vm397_vm0, %v1078_v52 }
 0x26c   : > { %v1156_v33 = vpop.f32.mrb[0].mxu1 }
 0x26d   : > { %v613_v34 = vadd.f32 %v1156_v33, %v517_v31  ;;  %v607_v35 = vpop.f32.mrb[1].mxu1  ;;  %v895_v31 = vpop.permute.xlu0 %894 }
 0x26e   : > { %v608_v36 = vadd.f32 %v607_v35, %v512_v32 }
 0x26f   : > { %v627_v37 = vmax.f32 %v613_v34, 0.0 }
 0x270   : > { %v626_v39 = vmax.f32 %v608_v36, 0.0  ;;  %v1159_v40 = vpop.f32.mrb[2].mxu1 }
 0x271   : > { %v623_v42 = vadd.f32 %v1159_v40, %v527_v38  ;;  %v617_v43 = vpop.f32.mrb[3].mxu1 }
 0x272   : > { %v1215_v44 = vpack.c.bf16 %v627_v37, %v626_v39  ;;  %v618_v45 = vadd.f32 %v617_v43, %v522_v41 }
 0x273   : > { %v629_v46 = vmax.f32 %v623_v42, 0.0 }
 0x274   : > { %v628_v47 = vmax.f32 %v618_v45, 0.0  ;;  %1216 = vmatprep.subr.bf16.mxu0 %v1215_v44 }
 0x275   : > { %1218 = vmatpush3.bf16.msra.mxu0 %v1215_v44 }
 0x276   : > { %v1219_v48 = vpack.c.bf16 %v629_v46, %v628_v47 }
 0x278   : > { %1220 = vmatprep.subr.bf16.mxu0 %v1219_v48 }
 0x279   : > { %1222 = vmatpush3.bf16.msra.mxu0 %v1219_v48 }
 0x27a   : > { %1231 = vmatprep.subr.bf16.mxu0 %v1355_v10 }
 0x27c   : > { %1169 = vmatmul.mubr.msk.f32.vlgmr.msra.gmra.mrb[4].mxu0 %vm397_vm0, %v1067_v49 }
 0x27d   : > { %1171 = vmatprep.mubr.msk.f32.mxu0 %vm397_vm0, %v1068_v50 }
 0x280   : > { %1172 = vmatmul.mubr.msk.f32.gmra.mrb[6].mxu0 %vm397_vm0, %v1069_v51 }
 0x281   : > { %1196 = vmatprep.mubr.msk.f32.mxu0 %vm1356_vm1, %v1357_v11 }
 0x34f   : > { %v1170_v55 = vpop.f32.mrb[4].mxu0 }
 0x350   : > { %v744_v56 = vadd.f32 %v1170_v55, %v648_v53  ;;  %v738_v57 = vpop.f32.mrb[5].mxu0 }
 0x351   : > { %v739_v58 = vadd.f32 %v738_v57, %v643_v54 }
 0x352   : > { %v758_v59 = vmax.f32 %v744_v56, 0.0 }
 0x353   : > { %v757_v61 = vmax.f32 %v739_v58, 0.0  ;;  %v1173_v62 = vpop.f32.mrb[6].mxu0 }
 0x354   : > { %v754_v0 = vadd.f32 %v1173_v62, %v658_v60  ;;  %v748_v1 = vpop.f32.mrb[7].mxu0 }
 0x355   : > { %v1223_v2 = vpack.c.bf16 %v758_v59, %v757_v61  ;;  %v749_v3 = vadd.f32 %v748_v1, %v653_v63 }
 0x356   : > { %v760_v4 = vmax.f32 %v754_v0, 0.0 }
 0x357   : > { %v759_v5 = vmax.f32 %v749_v3, 0.0  ;;  %1224 = vmatprep.subr.bf16.mxu1 %v1223_v2 }
 0x358   : > { %1226 = vmatpush3.bf16.msra.mxu1 %v1223_v2 }
 0x359   : > { %v1227_v6 = vpack.c.bf16 %v760_v4, %v759_v5 }
 0x35b   : > { %1228 = vmatprep.subr.bf16.mxu1 %v1227_v6 }
 0x35c   : > { %1230 = vmatpush3.bf16.msra.mxu1 %v1227_v6 }
 0x35f   : > { %1183 = vmatmul.mubr.msk.f32.vlgmr.msra.gmra.mrb[4].mxu1 %vm397_vm0, %v1079_v7 }
 0x360   : > { %1185 = vmatprep.mubr.msk.f32.mxu1 %vm397_vm0, %v1080_v8 }
 0x363   : > { %1186 = vmatmul.mubr.msk.f32.gmra.mrb[6].mxu1 %vm397_vm0, %v1081_v9 }
 0x432   : > { %v1184_v14 = vpop.f32.mrb[4].mxu1 }
 0x433   : > { %v875_v15 = vadd.f32 %v1184_v14, %v779_v12  ;;  %v869_v16 = vpop.f32.mrb[5].mxu1 }
 0x434   : > { %v870_v17 = vadd.f32 %v869_v16, %v774_v13 }
 0x435   : > { %v889_v18 = vmax.f32 %v875_v15, 0.0 }
 0x436   : > { %v888_v20 = vmax.f32 %v870_v17, 0.0  ;;  %v1187_v21 = vpop.f32.mrb[6].mxu1 }
 0x437   : > { %v885_v23 = vadd.f32 %v1187_v21, %v789_v19  ;;  %v879_v24 = vpop.f32.mrb[7].mxu1 }
 0x438   : > { %v1232_v25 = vpack.c.bf16 %v889_v18, %v888_v20  ;;  %v880_v26 = vadd.f32 %v879_v24, %v784_v22 }
 0x439   : > { %v891_v27 = vmax.f32 %v885_v23, 0.0 }
 0x43a   : > { %v890_v28 = vmax.f32 %v880_v26, 0.0  ;;  %1233 = vmatpush3.bf16.msra.mxu0 %v1232_v25 }
 0x43b   : > { %1234 = vmatprep.subr.bf16.mxu0 %v1355_v10 }
 0x43c   : > { %v1235_v29 = vpack.c.bf16 %v891_v27, %v890_v28 }
 0x43e   : > { %1236 = vmatpush3.bf16.msra.mxu0 %v1235_v29 }
 0x441   : > { %1197 = vmatmul.mubr.msk.f32.vlgmr.msra.gmra.mrb[8].mxu0 %vm397_vm0, %v282_v30 }
 0x514   : > { %v966_v32 = vpop.f32.mrb[8].mxu0 }
 0x515   : > { %v967_v33 = vadd.f32 %v966_v32, %v895_v31  ;;  %v1198_v34 = vpop.f32.mrb[9].mxu0 }
 0x517   : > { %970 = vst [vmem:[%s269_s21] sm:$0x7] %v967_v33 }
 0x518   : > { %1302 = shalt.err (!%p1299_p3)
}
 0x519   : > { %s1303_s16 = scalar_lea.hbm %s1600_s8, 64  ;;  %s1307_s19 = scalar_lea.hbm %s1649_s7, 512 }
 0x51a   : > { %p1304_p4 = scmp.ne.s32.totalorder %s1600_s8, %s1303_s16  ;;  %p1308_p9 = scmp.lt.u32.totalorder %s1600_s8, %s1649_s7 }
 0x51b   : > { %p1309_p10 = scmp.lt.u32.totalorder %s1307_s19, %s1303_s16  ;;  %p1311_p12 = scmp.lt.u32.totalorder %s1303_s16, %s1600_s8 }
 0x51c   : > { %p1305_p7 = pnand %p1304_p4, %p1437_p5 }
 0x51d   : > { %p1310_p11 = por %p1309_p10, %p1308_p9 }
 0x51e   : > { %p1306_p8 = pneg %p1305_p7 }
 0x51f   : > { %p1312_p13 = por %p1311_p12, %p1310_p11 }
 0x521   : > { %p1313_p0 = pnand %p1312_p13, %p1306_p8 }
 0x523   : > { %1316 = shalt.err (!%p1313_p0)
}
 0x524   : > { %1237 = dma.vmem_to_hbm [thread:$0]  (%p1437_p5), %s1602_s22, 64, %s1600_s8, %s972_s9  }
 0x525 PF: > { %p1243_p1 = scmp.ge.s32.totalorder %s1351_s27, 2  ;;  %s997_s23 = sand.u32 1, %s1339_s24  }
 0x526   : > { %s998_s29 = scalar_lea.sflag [#allocation3], %s997_s23 }
 0x527   : > { %p1240_p2 = pnand %p1243_p1, %p1441_p6 }
 0x529   : > { %1334 = dma.done.wait (!%p1240_p2), %s998_s29, 64  }
 0x52a   : > { %1336 = vsyncadd (!%p1240_p2), %s998_s29, 4294967232  ;;  %p17_p3 = scmp.ge.s32.totalorder %s1424_s30, 10   ;;  %s1652_s24 = smov %s1343_s25 }
 0x52b   : > { %s1653_s25 = smov %s1347_s26  ;;  %s1654_s26 = smov %s1435_s10 }
 0x52c   : > { %s1655_s27 = smov %s1424_s30  ;;  %19 = sbr.rel (!%p17_p3) target bundleno = 3 (0x3), region = 89 }
 0x533   :  { %1003 = vsyncpa [#allocation3], 1 }
 0x534   :  { %1005 = vsyncpa [#allocation3 + $0x1], 1 }

</bundles_post_ra>
